<compile_context>
chip_gen: v6e
topology: v6e:2x2x1
jax: 0.10.0
libtpu: 0.0.40
codegen_flags: <defaults>
</compile_context>

<pallas_src>
import math
import functools

import jax
import jax.numpy as jnp
from jax.experimental import pallas as pl
from jax.experimental.pallas import tpu as pltpu

_LANE = 128
_SIZES = [None, 100, 250, 150, 50, 1]  # None -> inputsize


def _round_up(n, m):
    return ((n + m - 1) // m) * m


def _cdiv(a, b):
    return -(-a // b)


def _smap_fc_kernel(x_ref,
                    w1_ref, b1_ref,
                    w2_ref, b2_ref,
                    w3_ref, b3_ref,
                    w4_ref, b4_ref,
                    w5_ref, b5_ref,
                    o_ref, *, sub_tiles):
    """One batch tile: 5 bf16 MXU matmuls (f32 accumulate) + f32 bias/ReLU, sigmoid on
    the single real output column.  `sub_tiles` independent half-tiles are statically
    unrolled so the scheduler can overlap one chain's VPU/EUP epilogue with the other's
    matmuls."""
    tile_b = x_ref.shape[0]
    sub_b = tile_b // sub_tiles

    def dense(h, w_ref, b_ref):
        # bf16 operands -> native MXU throughput; f32 accumulation; f32 bias add.
        return jnp.dot(h.astype(jnp.bfloat16), w_ref[...],
                       preferred_element_type=jnp.float32) + b_ref[...]

    for s in range(sub_tiles):          # static unroll (independent sub-chains)
        lo = s * sub_b                  # Python int -> static, sublane-aligned slices
        h = x_ref[lo:lo + sub_b, :]
        h = jnp.maximum(dense(h, w1_ref, b1_ref), 0.0)   # Linear(in, 100->128)  + ReLU
        h = jnp.maximum(dense(h, w2_ref, b2_ref), 0.0)   # Linear(128, 250->256) + ReLU
        h = jnp.maximum(dense(h, w3_ref, b3_ref), 0.0)   # Linear(256, 150->256) + ReLU
        h = jnp.maximum(dense(h, w4_ref, b4_ref), 0.0)   # Linear(256, 50->128)  + ReLU
        z = dense(h, w5_ref, b5_ref)[:, :1]              # only column 0 is real
        # Exact sigmoid, f32, on the single real column only.
        o_ref[lo:lo + sub_b, :] = (1.0 / (1.0 + jnp.exp(-z))).astype(o_ref.dtype)


def init_smap_fc_params(key, inputsize):
    """Xavier-uniform weights (PyTorch `Xavier`), zero biases.

    Weights are stored as (fan_in, fan_out) (transposed vs. PyTorch) so the kernel
    computes y = x @ W + b.  Biases are (1, fan_out).  All f32 (un-padded reference
    parameters)."""
    sizes = [inputsize] + _SIZES[1:]
    params = []
    for i in range(len(sizes) - 1):
        fan_in, fan_out = sizes[i], sizes[i + 1]
        key, sub = jax.random.split(key)
        std = 1.0 * math.sqrt(2.0 / (fan_in + fan_out))
        a = math.sqrt(3.0) * std
        w = jax.random.uniform(sub, (fan_in, fan_out), jnp.float32, minval=-a, maxval=a)
        b = jnp.zeros((1, fan_out), jnp.float32)
        params.append((w, b))
    return params


def pad_smap_fc_params(params):
    """Zero-pad hidden/output widths to multiples of 128 (exact through the ReLU chain)
    and cast weights to bf16 for native MXU operands.  Biases stay f32 (added after the
    f32-accumulated matmul).  The first layer keeps its true fan_in so x never needs
    feature padding.  Done once, outside the forward pass."""
    padded = []
    for idx, (w, b) in enumerate(params):
        fan_in, fan_out = w.shape
        in_pad = fan_in if idx == 0 else _round_up(fan_in, _LANE)
        out_pad = _round_up(fan_out, _LANE)
        wp = (jnp.zeros((in_pad, out_pad), jnp.bfloat16)
              .at[:fan_in, :fan_out].set(w.astype(jnp.bfloat16)))
        bp = jnp.zeros((1, out_pad), jnp.float32).at[:, :fan_out].set(b)
        padded.append((wp, bp))
    return padded


@functools.partial(jax.jit, static_argnames=("tile_b",))
def smap_fc_forward(x, padded_params, tile_b=2048):
    """x: (batch, inputsize) f32, padded_params from pad_smap_fc_params -> (batch, 1) f32."""
    batch, in_features = x.shape
    # Large tiles to amortize per-step overhead, but keep >= 2 grid steps so the
    # "parallel" batch axis can split across v7x's two TensorCores; never exceed the
    # (8-padded) batch.  Result is 8 or a multiple of 16.
    tile_b = max(8, min(tile_b,
                        _round_up(_cdiv(batch, 2), 16),
                        _round_up(batch, 8)))
    grid = (_cdiv(batch, tile_b),)
    sub_tiles = 2 if (tile_b >= 16 and tile_b % 16 == 0) else 1

    flat_args = [x]
    in_specs = [pl.BlockSpec((tile_b, in_features), lambda i: (i, 0))]
    for (w, b) in padded_params:
        flat_args += [w, b]
        # Constant index maps: weights/biases fetched once, resident across grid steps.
        in_specs.append(pl.BlockSpec(w.shape, lambda i: (0, 0)))
        in_specs.append(pl.BlockSpec(b.shape, lambda i: (0, 0)))

    # Advisory cost hint for XLA scheduling around the custom call.
    macs = sum(int(w.shape[0]) * int(w.shape[1]) for (w, _) in padded_params)
    weight_bytes = sum(w.size * w.dtype.itemsize + b.size * b.dtype.itemsize
                       for (w, b) in padded_params)
    cost = pl.CostEstimate(
        flops=2 * batch * macs,
        transcendentals=batch,                                   # one exp per row
        bytes_accessed=batch * (in_features + 1) * 4 + weight_bytes)

    out = pl.pallas_call(
        functools.partial(_smap_fc_kernel, sub_tiles=sub_tiles),
        grid=grid,
        out_shape=jax.ShapeDtypeStruct((batch, 1), jnp.float32),
        in_specs=in_specs,
        out_specs=pl.BlockSpec((tile_b, 1), lambda i: (i, 0)),
        compiler_params=pltpu.CompilerParams(
            dimension_semantics=("parallel",),   # megacore sharding on v7x
        ),
        cost_estimate=cost,
    )(*flat_args)
    return out  # already (batch, 1); no wrapper column gather


def smap_fc_reference(x, params):
    """Pure-JAX f32 reference of the same forward pass (unpadded params)."""
    h = x
    n = len(params)
    for i, (w, b) in enumerate(params):
        h = h @ w + b
        if i < n - 1:
            h = jnp.maximum(h, 0.0)
    return jax.nn.sigmoid(h)


if __name__ == "__main__":
    key = jax.random.PRNGKey(0)
    key_x, key_p, key_x2, key_p2 = jax.random.split(key, 4)

    # Small smoke test (single grid step, single sub-tile).
    inputsize, batch = 32, 2
    x = jax.random.normal(key_x, (batch, inputsize), jnp.float32)
    params = init_smap_fc_params(key_p, inputsize)
    padded_params = pad_smap_fc_params(params)
    out = jax.block_until_ready(smap_fc_forward(x, padded_params))
    ref = smap_fc_reference(x, params)
    assert out.shape == (batch, 1), out.shape
    # bf16 MXU operands with f32 accumulation -> looser tolerance than pure f32.
    assert jnp.allclose(out, ref, atol=2e-2, rtol=2e-2), (out, ref)

    # Second check: multi-step grid, ragged last tile, two-subtile interleave path.
    x2 = jax.random.normal(key_x2, (200, 48), jnp.float32)
    params2 = init_smap_fc_params(key_p2, 48)
    padded_params2 = pad_smap_fc_params(params2)
    out2 = jax.block_until_ready(smap_fc_forward(x2, padded_params2))
    ref2 = smap_fc_reference(x2, params2)
    assert out2.shape == (200, 1), out2.shape
    assert jnp.allclose(out2, ref2, atol=2e-2, rtol=2e-2)

    print("KERNEL_OK")
</pallas_src>

<mosaic_0001>
module attributes {stable_mosaic.version = 11 : i64} {
  func.func @_smap_fc_kernel(%arg0: i32, %arg1: memref<8x32xf32, #tpu.memory_space<vmem>>, %arg2: memref<32x128xbf16, #tpu.memory_space<vmem>>, %arg3: memref<1x128xf32, #tpu.memory_space<vmem>>, %arg4: memref<128x256xbf16, #tpu.memory_space<vmem>>, %arg5: memref<1x256xf32, #tpu.memory_space<vmem>>, %arg6: memref<256x256xbf16, #tpu.memory_space<vmem>>, %arg7: memref<1x256xf32, #tpu.memory_space<vmem>>, %arg8: memref<256x128xbf16, #tpu.memory_space<vmem>>, %arg9: memref<1x128xf32, #tpu.memory_space<vmem>>, %arg10: memref<128x128xbf16, #tpu.memory_space<vmem>>, %arg11: memref<1x128xf32, #tpu.memory_space<vmem>>, %arg12: memref<8x1xf32, #tpu.memory_space<vmem>>) attributes {dimension_semantics = [#tpu.dimension_semantics<parallel>], iteration_bounds = array<i64: 1>, scalar_prefetch = 0 : i64, scratch_operands = 0 : i64, tpu.core_type = #tpu.core_type<tc>, window_params = [{transform_indices = @transform_0, window_bounds = array<i64: 8, 32>}, {pipeline_mode = #tpu.pipeline_mode<synchronous>, transform_indices = @transform_1, window_bounds = array<i64: 32, 128>}, {pipeline_mode = #tpu.pipeline_mode<synchronous>, transform_indices = @transform_2, window_bounds = array<i64: 1, 128>}, {pipeline_mode = #tpu.pipeline_mode<synchronous>, transform_indices = @transform_3, window_bounds = array<i64: 128, 256>}, {pipeline_mode = #tpu.pipeline_mode<synchronous>, transform_indices = @transform_4, window_bounds = array<i64: 1, 256>}, {pipeline_mode = #tpu.pipeline_mode<synchronous>, transform_indices = @transform_5, window_bounds = array<i64: 256, 256>}, {pipeline_mode = #tpu.pipeline_mode<synchronous>, transform_indices = @transform_6, window_bounds = array<i64: 1, 256>}, {pipeline_mode = #tpu.pipeline_mode<synchronous>, transform_indices = @transform_7, window_bounds = array<i64: 256, 128>}, {pipeline_mode = #tpu.pipeline_mode<synchronous>, transform_indices = @transform_8, window_bounds = array<i64: 1, 128>}, {pipeline_mode = #tpu.pipeline_mode<synchronous>, transform_indices = @transform_9, window_bounds = array<i64: 128, 128>}, {pipeline_mode = #tpu.pipeline_mode<synchronous>, transform_indices = @transform_10, window_bounds = array<i64: 1, 128>}, {transform_indices = @transform_11, window_bounds = array<i64: 8, 1>}]} {
    %c0 = arith.constant 0 : index
    %c0_0 = arith.constant 0 : index
    %0 = vector.load %arg1[%c0, %c0_0] : memref<8x32xf32, #tpu.memory_space<vmem>>, vector<8x32xf32>
    %1 = arith.truncf %0 : vector<8x32xf32> to vector<8x32xbf16>
    %c0_1 = arith.constant 0 : index
    %c0_2 = arith.constant 0 : index
    %2 = vector.load %arg2[%c0_1, %c0_2] : memref<32x128xbf16, #tpu.memory_space<vmem>>, vector<32x128xbf16>
    %cst = arith.constant dense<0.000000e+00> : vector<8x128xf32>
    %3 = tpu.matmul %1, %2, %cst {dimension_numbers = #tpu.dot_dimension_numbers<[1], [0], [0], [1], [0, 0, 1, 1], [], []>} : vector<8x32xbf16>, vector<32x128xbf16>, vector<8x128xf32> -> vector<8x128xf32>
    %c0_3 = arith.constant 0 : index
    %c0_4 = arith.constant 0 : index
    %4 = vector.load %arg3[%c0_3, %c0_4] : memref<1x128xf32, #tpu.memory_space<vmem>>, vector<1x128xf32>
    %5 = vector.broadcast %4 : vector<1x128xf32> to vector<8x128xf32>
    %6 = arith.addf %3, %5 : vector<8x128xf32>
    %cst_5 = arith.constant 0.000000e+00 : f32
    %7 = vector.broadcast %cst_5 : f32 to vector<8x128xf32>
    %8 = arith.maximumf %6, %7 : vector<8x128xf32>
    %9 = arith.truncf %8 : vector<8x128xf32> to vector<8x128xbf16>
    %c0_6 = arith.constant 0 : index
    %c0_7 = arith.constant 0 : index
    %10 = vector.load %arg4[%c0_6, %c0_7] : memref<128x256xbf16, #tpu.memory_space<vmem>>, vector<128x256xbf16>
    %cst_8 = arith.constant dense<0.000000e+00> : vector<8x256xf32>
    %11 = tpu.matmul %9, %10, %cst_8 {dimension_numbers = #tpu.dot_dimension_numbers<[1], [0], [0], [1], [0, 0, 1, 1], [], []>} : vector<8x128xbf16>, vector<128x256xbf16>, vector<8x256xf32> -> vector<8x256xf32>
    %c0_9 = arith.constant 0 : index
    %c0_10 = arith.constant 0 : index
    %12 = vector.load %arg5[%c0_9, %c0_10] : memref<1x256xf32, #tpu.memory_space<vmem>>, vector<1x256xf32>
    %13 = vector.broadcast %12 : vector<1x256xf32> to vector<8x256xf32>
    %14 = arith.addf %11, %13 : vector<8x256xf32>
    %cst_11 = arith.constant 0.000000e+00 : f32
    %15 = vector.broadcast %cst_11 : f32 to vector<8x256xf32>
    %16 = arith.maximumf %14, %15 : vector<8x256xf32>
    %17 = arith.truncf %16 : vector<8x256xf32> to vector<8x256xbf16>
    %c0_12 = arith.constant 0 : index
    %c0_13 = arith.constant 0 : index
    %18 = vector.load %arg6[%c0_12, %c0_13] : memref<256x256xbf16, #tpu.memory_space<vmem>>, vector<256x256xbf16>
    %cst_14 = arith.constant dense<0.000000e+00> : vector<8x256xf32>
    %19 = tpu.matmul %17, %18, %cst_14 {dimension_numbers = #tpu.dot_dimension_numbers<[1], [0], [0], [1], [0, 0, 1, 1], [], []>} : vector<8x256xbf16>, vector<256x256xbf16>, vector<8x256xf32> -> vector<8x256xf32>
    %c0_15 = arith.constant 0 : index
    %c0_16 = arith.constant 0 : index
    %20 = vector.load %arg7[%c0_15, %c0_16] : memref<1x256xf32, #tpu.memory_space<vmem>>, vector<1x256xf32>
    %21 = vector.broadcast %20 : vector<1x256xf32> to vector<8x256xf32>
    %22 = arith.addf %19, %21 : vector<8x256xf32>
    %cst_17 = arith.constant 0.000000e+00 : f32
    %23 = vector.broadcast %cst_17 : f32 to vector<8x256xf32>
    %24 = arith.maximumf %22, %23 : vector<8x256xf32>
    %25 = arith.truncf %24 : vector<8x256xf32> to vector<8x256xbf16>
    %c0_18 = arith.constant 0 : index
    %c0_19 = arith.constant 0 : index
    %26 = vector.load %arg8[%c0_18, %c0_19] : memref<256x128xbf16, #tpu.memory_space<vmem>>, vector<256x128xbf16>
    %cst_20 = arith.constant dense<0.000000e+00> : vector<8x128xf32>
    %27 = tpu.matmul %25, %26, %cst_20 {dimension_numbers = #tpu.dot_dimension_numbers<[1], [0], [0], [1], [0, 0, 1, 1], [], []>} : vector<8x256xbf16>, vector<256x128xbf16>, vector<8x128xf32> -> vector<8x128xf32>
    %c0_21 = arith.constant 0 : index
    %c0_22 = arith.constant 0 : index
    %28 = vector.load %arg9[%c0_21, %c0_22] : memref<1x128xf32, #tpu.memory_space<vmem>>, vector<1x128xf32>
    %29 = vector.broadcast %28 : vector<1x128xf32> to vector<8x128xf32>
    %30 = arith.addf %27, %29 : vector<8x128xf32>
    %cst_23 = arith.constant 0.000000e+00 : f32
    %31 = vector.broadcast %cst_23 : f32 to vector<8x128xf32>
    %32 = arith.maximumf %30, %31 : vector<8x128xf32>
    %33 = arith.truncf %32 : vector<8x128xf32> to vector<8x128xbf16>
    %c0_24 = arith.constant 0 : index
    %c0_25 = arith.constant 0 : index
    %34 = vector.load %arg10[%c0_24, %c0_25] : memref<128x128xbf16, #tpu.memory_space<vmem>>, vector<128x128xbf16>
    %cst_26 = arith.constant dense<0.000000e+00> : vector<8x128xf32>
    %35 = tpu.matmul %33, %34, %cst_26 {dimension_numbers = #tpu.dot_dimension_numbers<[1], [0], [0], [1], [0, 0, 1, 1], [], []>} : vector<8x128xbf16>, vector<128x128xbf16>, vector<8x128xf32> -> vector<8x128xf32>
    %c0_27 = arith.constant 0 : index
    %c0_28 = arith.constant 0 : index
    %36 = vector.load %arg11[%c0_27, %c0_28] : memref<1x128xf32, #tpu.memory_space<vmem>>, vector<1x128xf32>
    %37 = vector.broadcast %36 : vector<1x128xf32> to vector<8x128xf32>
    %38 = arith.addf %35, %37 : vector<8x128xf32>
    %39 = vector.extract_strided_slice %38 {offsets = [0, 0], sizes = [8, 1], strides = [1, 1]} : vector<8x128xf32> to vector<8x1xf32>
    %cst_29 = arith.constant 0.000000e+00 : f32
    %40 = vector.broadcast %cst_29 : f32 to vector<8x1xf32>
    %41 = arith.subf %40, %39 : vector<8x1xf32>
    %42 = math.exp %41 : vector<8x1xf32>
    %cst_30 = arith.constant 1.000000e+00 : f32
    %43 = vector.broadcast %cst_30 : f32 to vector<8x1xf32>
    %44 = arith.addf %43, %42 : vector<8x1xf32>
    %cst_31 = arith.constant 1.000000e+00 : f32
    %45 = vector.broadcast %cst_31 : f32 to vector<8x1xf32>
    %46 = arith.divf %45, %44 : vector<8x1xf32>
    %c0_32 = arith.constant 0 : index
    %c0_33 = arith.constant 0 : index
    %47 = vector.load %arg12[%c0_32, %c0_33] : memref<8x1xf32, #tpu.memory_space<vmem>>, vector<8x1xf32>
    tpu.vector_store %arg12[%c0_32, %c0_33], %46 {strides = array<i32>} : memref<8x1xf32, #tpu.memory_space<vmem>>, vector<8x1xf32>,
    return
  }
  func.func @transform_0(%arg0: i32) -> (i32, i32) {
    %c0_i32 = arith.constant 0 : i32
    %c0_i32_0 = arith.constant 0 : i32
    return %arg0, %c0_i32 : i32, i32
  }
  func.func @transform_1(%arg0: i32) -> (i32, i32) {
    %c0_i32 = arith.constant 0 : i32
    %c0_i32_0 = arith.constant 0 : i32
    %c0_i32_1 = arith.constant 0 : i32
    return %c0_i32, %c0_i32_0 : i32, i32
  }
  func.func @transform_2(%arg0: i32) -> (i32, i32) {
    %c0_i32 = arith.constant 0 : i32
    %c0_i32_0 = arith.constant 0 : i32
    %c0_i32_1 = arith.constant 0 : i32
    return %c0_i32, %c0_i32_0 : i32, i32
  }
  func.func @transform_3(%arg0: i32) -> (i32, i32) {
    %c0_i32 = arith.constant 0 : i32
    %c0_i32_0 = arith.constant 0 : i32
    %c0_i32_1 = arith.constant 0 : i32
    return %c0_i32, %c0_i32_0 : i32, i32
  }
  func.func @transform_4(%arg0: i32) -> (i32, i32) {
    %c0_i32 = arith.constant 0 : i32
    %c0_i32_0 = arith.constant 0 : i32
    %c0_i32_1 = arith.constant 0 : i32
    return %c0_i32, %c0_i32_0 : i32, i32
  }
  func.func @transform_5(%arg0: i32) -> (i32, i32) {
    %c0_i32 = arith.constant 0 : i32
    %c0_i32_0 = arith.constant 0 : i32
    %c0_i32_1 = arith.constant 0 : i32
    return %c0_i32, %c0_i32_0 : i32, i32
  }
  func.func @transform_6(%arg0: i32) -> (i32, i32) {
    %c0_i32 = arith.constant 0 : i32
    %c0_i32_0 = arith.constant 0 : i32
    %c0_i32_1 = arith.constant 0 : i32
    return %c0_i32, %c0_i32_0 : i32, i32
  }
  func.func @transform_7(%arg0: i32) -> (i32, i32) {
    %c0_i32 = arith.constant 0 : i32
    %c0_i32_0 = arith.constant 0 : i32
    %c0_i32_1 = arith.constant 0 : i32
    return %c0_i32, %c0_i32_0 : i32, i32
  }
  func.func @transform_8(%arg0: i32) -> (i32, i32) {
    %c0_i32 = arith.constant 0 : i32
    %c0_i32_0 = arith.constant 0 : i32
    %c0_i32_1 = arith.constant 0 : i32
    return %c0_i32, %c0_i32_0 : i32, i32
  }
  func.func @transform_9(%arg0: i32) -> (i32, i32) {
    %c0_i32 = arith.constant 0 : i32
    %c0_i32_0 = arith.constant 0 : i32
    %c0_i32_1 = arith.constant 0 : i32
    return %c0_i32, %c0_i32_0 : i32, i32
  }
  func.func @transform_10(%arg0: i32) -> (i32, i32) {
    %c0_i32 = arith.constant 0 : i32
    %c0_i32_0 = arith.constant 0 : i32
    %c0_i32_1 = arith.constant 0 : i32
    return %c0_i32, %c0_i32_0 : i32, i32
  }
  func.func @transform_11(%arg0: i32) -> (i32, i32) {
    %c0_i32 = arith.constant 0 : i32
    %c0_i32_0 = arith.constant 0 : i32
    return %arg0, %c0_i32 : i32, i32
  }
}

</mosaic_0001>

<bundles_post_ra>
// kernel: smap_fc_forward.1
= control target key start
LH: loop header
LB: loop body
LE: loop exit
PB: predicated region body
PF: predicated region fallthrough
CT: control target
= control target key end

     0   :  { %16 = vsyncpa [#allocation3], 0  ;;  %s1460_s0 = inlined_call_operand.hbm [shape: f32[2,32], index: 0, kind: input, shape index: {}]   ;;  %s1461_s1 = inlined_call_operand.hbm [shape: bf16[32,128], index: 1, kind: input, shape index: {}]   ;;  %s1462_s2 = inlined_call_operand.vmem [shape: f32[1,128], index: 2, kind: input, shape index: {}]   ;;  %s1463_s3 = inlined_call_operand.hbm [shape: bf16[128,256], index: 3, kind: input, shape index: {}]   ;;  %s1464_s4 = inlined_call_operand.vmem [shape: f32[1,256], index: 4, kind: input, shape index: {}]   ;;  %s1465_s5 = inlined_call_operand.hbm [shape: bf16[256,256], index: 5, kind: input, shape index: {}]   ;;  %s1466_s6 = inlined_call_operand.vmem [shape: f32[1,256], index: 6, kind: input, shape index: {}]   ;;  %s1467_s7 = inlined_call_operand.hbm [shape: bf16[256,128], index: 7, kind: input, shape index: {}]   ;;  %s1468_s8 = inlined_call_operand.vmem [shape: f32[1,128], index: 8, kind: input, shape index: {}]   ;;  %s1469_s9 = inlined_call_operand.hbm [shape: bf16[128,128], index: 9, kind: input, shape index: {}]   ;;  %s1470_s10 = inlined_call_operand.vmem [shape: f32[1,128], index: 10, kind: input, shape index: {}]   ;;  %s1471_s11 = inlined_call_operand.vmem [shape: f32[2,1], index: 11, kind: output, shape index: {}]  }
   0x1   :  { %17 = vsyncpa [#allocation5], 0 }
   0x2   :  { %18 = vsyncpa [#allocation8], 0 }
   0x3   :  { %19 = vsyncpa [#allocation11], 0 }
   0x4   :  { %24 = vsyncadd [#allocation3], 96  ;;  %s1320_s17 = smov [#allocation4]  }
   0x5   :  { %s37_s18 = sshll.u32 %s1320_s17, 4  ;;  %s38_s18 = int_to_ptr.vmem [resolvable:$true] %s37_s18 }
   0x6   :  { %s1200_s19 = scalar_lea.vmem %s38_s18, 256  ;;  %p1205_p1 = scmp.lt.s32.totalorder %s38_s18, %s38_s18 }
   0x7   :  { %p1201_p0 = scmp.ne.s32.totalorder %s38_s18, %s1200_s19  ;;  %p1206_p2 = scmp.lt.s32.totalorder %s1200_s19, %s1200_s19 }
   0x9   :  { %p1207_p3 = por %p1206_p2, %p1205_p1 }
   0xb   :  { %p1208_p4 = pnand %p1207_p3, %p1201_p0 }
   0xd   :  { %1211 = shalt.err (!%p1208_p4)
}
   0xe   :  { %s1321_s20 = smov 64   ;;  %s1322_s21 = smov 4  }
   0xf   :  { %43 = dma.hbm_to_vmem [thread:$0]  %s1461_s1, 256, %s38_s18, [#allocation5], %s1321_s20, %s1321_s20, %s1322_s21  }
  0x10   :  { %s1323_s24 = smov [#allocation7]   ;;  %s1324_s26 = smov [#allocation2]  }
  0x11   :  { %s65_s25 = sshll.u32 %s1323_s24, 4  ;;  %s25_s27 = sshll.u32 %s1324_s26, 4  ;;  %s66_s25 = int_to_ptr.vmem [resolvable:$true] %s65_s25  ;;  %s26_s27 = int_to_ptr.vmem [resolvable:$true] %s25_s27 }
  0x12   :  { %s1220_s28 = scalar_lea.vmem %s66_s25, 4096  ;;  %p1225_p6 = scmp.lt.s32.totalorder %s66_s25, %s66_s25 }
  0x13   :  { %p1221_p5 = scmp.ne.s32.totalorder %s66_s25, %s1220_s28  ;;  %p1226_p7 = scmp.lt.s32.totalorder %s1220_s28, %s1220_s28 }
  0x15   :  { %p1227_p8 = por %p1226_p7, %p1225_p6 }
  0x17   :  { %p1228_p9 = pnand %p1227_p8, %p1221_p5 }
  0x19   :  { %1231 = shalt.err (!%p1228_p9)
}
  0x1a   :  { %s1325_s29 = smov 128   ;;  %s1326_s30 = smov 8  }
  0x1b   :  { %71 = dma.hbm_to_vmem [thread:$0]  %s1465_s5, 4096, %s66_s25, [#allocation8], %s1325_s29, %s1325_s29, %s1326_s30  }
  0x1c   :  { %s1240_s1 = scalar_lea.vmem %s26_s27, 32  ;;  %s1244_s14 = scalar_lea.vmem %s26_s27, 128 }
  0x1d   :  { %p1241_p10 = scmp.ne.s32.totalorder %s26_s27, %s1240_s1  ;;  %p1245_p11 = scmp.lt.s32.totalorder %s26_s27, %s26_s27 }
  0x1e   :  { %p1246_p12 = scmp.lt.s32.totalorder %s1244_s14, %s1240_s1 }
  0x20   :  { %p1247_p13 = por %p1246_p12, %p1245_p11 }
  0x22   :  { %p1248_p0 = pnand %p1247_p13, %p1241_p10 }
  0x24   :  { %1251 = shalt.err (!%p1248_p0)
}
  0x25   :  { %s1327_s15 = smov 32   ;;  %s1328_s16 = smov 2  }
  0x26   :  { %31 = dma.hbm_to_vmem [thread:$0]  %s1460_s0, 32, %s26_s27, [#allocation3], %s1327_s15, %s1327_s15, %s1328_s16  }
  0x27   :  { %s1329_s19 = smov [#allocation6]   ;;  %s1330_s23 = smov [#allocation9]  }
  0x28   :  { %s51_s22 = sshll.u32 %s1329_s19, 4  ;;  %s79_s5 = sshll.u32 %s1330_s23, 4  ;;  %s52_s22 = int_to_ptr.vmem [resolvable:$true] %s51_s22  ;;  %s80_s5 = int_to_ptr.vmem [resolvable:$true] %s79_s5 }
  0x29   :  { %s1260_s24 = scalar_lea.vmem %s52_s22, 2048  ;;  %p1265_p2 = scmp.lt.s32.totalorder %s52_s22, %s52_s22 }
  0x2a   :  { %p1261_p1 = scmp.ne.s32.totalorder %s52_s22, %s1260_s24  ;;  %p1266_p3 = scmp.lt.s32.totalorder %s1260_s24, %s1260_s24 }
  0x2c   :  { %p1267_p4 = por %p1266_p3, %p1265_p2 }
  0x2e   :  { %p1268_p5 = pnand %p1267_p4, %p1261_p1 }
  0x30   :  { %1271 = shalt.err (!%p1268_p5)
}
  0x31   :  { %57 = dma.hbm_to_vmem [thread:$0]  %s1463_s3, 2048, %s52_s22, [#allocation5], %s1325_s29, %s1325_s29, %s1326_s30  }
  0x32   :  { %s1280_s0 = scalar_lea.vmem %s80_s5, 2048  ;;  %p1285_p7 = scmp.lt.s32.totalorder %s80_s5, %s80_s5 }
  0x33   :  { %p1281_p6 = scmp.ne.s32.totalorder %s80_s5, %s1280_s0  ;;  %p1286_p8 = scmp.lt.s32.totalorder %s1280_s0, %s1280_s0 }
  0x35   :  { %p1287_p9 = por %p1286_p8, %p1285_p7 }
  0x37   :  { %p1288_p10 = pnand %p1287_p9, %p1281_p6 }
  0x39   :  { %1291 = shalt.err (!%p1288_p10)
}
  0x3a   :  { %85 = dma.hbm_to_vmem [thread:$0]  %s1467_s7, 2048, %s80_s5, [#allocation8], %s1321_s20, %s1321_s20, %s1322_s21  }
  0x3b   :  { %s1331_s12 = smov [#allocation10]  }
  0x3c   :  { %s93_s13 = sshll.u32 %s1331_s12, 4  ;;  %s94_s13 = int_to_ptr.vmem [resolvable:$true] %s93_s13 }
  0x3d   :  { %s1300_s1 = scalar_lea.vmem %s94_s13, 1024  ;;  %p1305_p12 = scmp.lt.s32.totalorder %s94_s13, %s94_s13 }
  0x3e   :  { %p1301_p11 = scmp.ne.s32.totalorder %s94_s13, %s1300_s1  ;;  %p1306_p13 = scmp.lt.s32.totalorder %s1300_s1, %s1300_s1 }
  0x40   :  { %p1307_p0 = por %p1306_p13, %p1305_p12 }
  0x42   :  { %p1308_p1 = pnand %p1307_p0, %p1301_p11 }
  0x44   :  { %1311 = shalt.err (!%p1308_p1)
}
  0x45   :  { %99 = dma.hbm_to_vmem [thread:$0]  %s1469_s9, 1024, %s94_s13, [#allocation11], %s1321_s20, %s1321_s20, %s1322_s21  }
  0x46   :  { %1312 = dma.done.wait [#allocation3], 128  }
  0x47   :  { %1313 = vsyncadd [#allocation3], 4294967168 }
  0x48   :  { %1314 = dma.done.wait [#allocation5], 2304  }
  0x49   :  { %1315 = vsyncadd [#allocation5], 4294964992 }
  0x4a   :  { %1316 = dma.done.wait [#allocation8], 6144  }
  0x4b   :  { %1317 = vsyncadd [#allocation8], 4294961152 }
  0x4c   :  { %1318 = dma.done.wait [#allocation11], 1024  }
  0x4d   :  { %1319 = vsyncadd [#allocation11], 4294966272  ;;  %v1332_v0 = vmov 0.0   ;;  %vm1333_vm0 = vmmov 0   ;;  %v1090_v1 = vld [vmem:[#allocation4 + $0x8] sm:$0xff]   ;;  %v1091_v2 = vld [vmem:[#allocation4] sm:$0xff]  }
  0x4e   :  { %1047 = vmatprep.subr.bf16.mxu0 %v1332_v0  ;;  %1051 = vmatprep.mubr.msk.bf16.mxu0 %vm1333_vm0, %v1332_v0  ;;  %v121_v3 = vld [vmem:[#allocation2] sm:$0xff]  ;;  %v1092_v4 = vld [vmem:[#allocation6 + $0x74] ss:$8 sps:$4 sm:$0xff]   ;;  %v1094_v5 = vld [vmem:[#allocation6 + $0x70] ss:$8 sps:$4 sm:$0xff]   ;;  %vm146_vm1 = vcmask 261120  }
  0x4f   :  { %1048 = vmatpush3.bf16.msra.mxu0 %v1090_v1  ;;  %v1095_v6 = vld [vmem:[#allocation6 + $0x64] ss:$8 sps:$4 sm:$0xff]   ;;  %v122_v7 = vpack.c.bf16 %v121_v3, %v121_v3  ;;  %300 = vmatprep.subr.bf16.mxu1 %v1092_v4  ;;  %v1097_v8 = vld [vmem:[#allocation6 + $0x60] ss:$8 sps:$4 sm:$0xff]   ;;  %v1098_v9 = vld [vmem:[#allocation6 + $0x54] ss:$8 sps:$4 sm:$0xff]  }
  0x50   :  { %1049 = vmatprep.subr.bf16.mxu0 %v1332_v0  ;;  %301 = vmatpush1.bf16.msra.mxu1 %v1094_v5  ;;  %v1100_v10 = vld [vmem:[#allocation6 + $0x50] ss:$8 sps:$4 sm:$0xff]   ;;  %v1101_v11 = vld [vmem:[#allocation6 + $0x44] ss:$8 sps:$4 sm:$0xff]   ;;  %v1103_v12 = vld [vmem:[#allocation6 + $0x40] ss:$8 sps:$4 sm:$0xff]  }
  0x51   :  { %302 = vmatprep.subr.bf16.mxu1 %v1095_v6  ;;  %v1104_v13 = vld [vmem:[#allocation6 + $0x34] ss:$8 sps:$4 sm:$0xff]   ;;  %v1106_v14 = vld [vmem:[#allocation6 + $0x30] ss:$8 sps:$4 sm:$0xff]   ;;  %v1107_v15 = vld [vmem:[#allocation6 + $0x24] ss:$8 sps:$4 sm:$0xff]  }
  0x52   :  { %v1109_v16 = vld [vmem:[#allocation6 + $0x20] ss:$8 sps:$4 sm:$0xff]   ;;  %v1110_v17 = vld [vmem:[#allocation6 + $0x14] ss:$8 sps:$4 sm:$0xff]   ;;  %v1112_v18 = vld [vmem:[#allocation6 + $0x10] ss:$8 sps:$4 sm:$0xff]  }
  0x53   :  { %1050 = vmatpush3.bf16.msra.mxu0 %v1091_v2  ;;  %v1113_v19 = vld [vmem:[#allocation6 + $0x4] ss:$8 sps:$4 sm:$0xff]   ;;  %v1115_v20 = vld [vmem:[#allocation6] ss:$8 sps:$4 sm:$0xff]   ;;  %v1334_v21 = vmov 0   ;;  %v1164_v62 = vld [vmem:[#allocation9 + $0x78] sm:$0xff]  }
  0x54   :  { %303 = vmatpush1.bf16.msra.mxu1 %v1097_v8  ;;  %332 = vmatprep.mubr.bf16.mxu1 %v1334_v21  ;;  %v1116_v22 = vld [vmem:[#allocation7 + $0x70] ss:$8 sps:$4 sm:$0xff]   ;;  %v1118_v23 = vld [vmem:[#allocation7 + $0x74] ss:$8 sps:$4 sm:$0xff]   ;;  %v1121_v24 = vld [vmem:[#allocation7 + $0x64] ss:$8 sps:$4 sm:$0xff]  }
  0x55   :  { %304 = vmatprep.subr.bf16.mxu1 %v1098_v9  ;;  %549 = vmatprep.subr.bf16.mxu0 %v1118_v23  ;;  %v1119_v25 = vld [vmem:[#allocation7 + $0x60] ss:$8 sps:$4 sm:$0xff]   ;;  %v1124_v26 = vld [vmem:[#allocation7 + $0x54] ss:$8 sps:$4 sm:$0xff]   ;;  %v1122_v27 = vld [vmem:[#allocation7 + $0x50] ss:$8 sps:$4 sm:$0xff]  }
  0x56   :  { %1052 = vmatmul.mubr.msk.bf16.vlgmr.msra.gmra.mxu0 %vm146_vm1, %v122_v7  ;;  %v1127_v28 = vld [vmem:[#allocation7 + $0x44] ss:$8 sps:$4 sm:$0xff]   ;;  %v1125_v29 = vld [vmem:[#allocation7 + $0x40] ss:$8 sps:$4 sm:$0xff]   ;;  %v1130_v30 = vld [vmem:[#allocation7 + $0x34] ss:$8 sps:$4 sm:$0xff]  }
  0x57   :  { %550 = vmatpush1.bf16.msra.mxu0 %v1116_v22  ;;  %v1128_v31 = vld [vmem:[#allocation7 + $0x30] ss:$8 sps:$4 sm:$0xff]   ;;  %v1133_v32 = vld [vmem:[#allocation7 + $0x24] ss:$8 sps:$4 sm:$0xff]   ;;  %v1131_v33 = vld [vmem:[#allocation7 + $0x20] ss:$8 sps:$4 sm:$0xff]  }
  0x58   :  { %305 = vmatpush1.bf16.msra.mxu1 %v1100_v10  ;;  %551 = vmatprep.subr.bf16.mxu0 %v1121_v24  ;;  %v1136_v34 = vld [vmem:[#allocation7 + $0x14] ss:$8 sps:$4 sm:$0xff]   ;;  %v1134_v35 = vld [vmem:[#allocation7 + $0x10] ss:$8 sps:$4 sm:$0xff]   ;;  %v1139_v36 = vld [vmem:[#allocation7 + $0x4] ss:$8 sps:$4 sm:$0xff]  }
  0x59   :  { %306 = vmatprep.subr.bf16.mxu1 %v1101_v11  ;;  %v1137_v37 = vld [vmem:[#allocation7] ss:$8 sps:$4 sm:$0xff]   ;;  %v1142_v38 = vld [vmem:[#allocation7 + $0xf4] ss:$8 sps:$4 sm:$0xff]   ;;  %v1140_v39 = vld [vmem:[#allocation7 + $0xf0] ss:$8 sps:$4 sm:$0xff]   ;;  %v210_v11 = vlaneseq }
  0x5a   :  { %v1145_v40 = vld [vmem:[#allocation7 + $0xe4] ss:$8 sps:$4 sm:$0xff]   ;;  %v1143_v41 = vld [vmem:[#allocation7 + $0xe0] ss:$8 sps:$4 sm:$0xff]   ;;  %v1148_v42 = vld [vmem:[#allocation7 + $0xd4] ss:$8 sps:$4 sm:$0xff]  }
  0x5b   :  { %552 = vmatpush1.bf16.msra.mxu0 %v1119_v25  ;;  %v1146_v43 = vld [vmem:[#allocation7 + $0xd0] ss:$8 sps:$4 sm:$0xff]   ;;  %v1151_v44 = vld [vmem:[#allocation7 + $0xc4] ss:$8 sps:$4 sm:$0xff]   ;;  %v1149_v45 = vld [vmem:[#allocation7 + $0xc0] ss:$8 sps:$4 sm:$0xff]  }
  0x5c   :  { %307 = vmatpush1.bf16.msra.mxu1 %v1103_v12  ;;  %553 = vmatprep.subr.bf16.mxu0 %v1124_v26  ;;  %v1154_v46 = vld [vmem:[#allocation7 + $0xb4] ss:$8 sps:$4 sm:$0xff]   ;;  %v1152_v47 = vld [vmem:[#allocation7 + $0xb0] ss:$8 sps:$4 sm:$0xff]   ;;  %v1157_v48 = vld [vmem:[#allocation7 + $0xa4] ss:$8 sps:$4 sm:$0xff]  }
  0x5d   :  { %308 = vmatprep.subr.bf16.mxu1 %v1104_v13  ;;  %v1155_v49 = vld [vmem:[#allocation7 + $0xa0] ss:$8 sps:$4 sm:$0xff]   ;;  %v1160_v58 = vld [vmem:[#allocation7 + $0x94] ss:$8 sps:$4 sm:$0xff]   ;;  %v1158_v59 = vld [vmem:[#allocation7 + $0x90] ss:$8 sps:$4 sm:$0xff]  }
  0x5e   :  { %v935_v50 = vld [vmem:[%s1462_s2] ss:$0 sm:$0xff]  ;;  %v1163_v60 = vld [vmem:[#allocation7 + $0x84] ss:$8 sps:$4 sm:$0xff]   ;;  %v1165_v63 = vld [vmem:[#allocation9 + $0x38] sm:$0xff]   ;;  %v211_v12 = vshrl.u32 %v210_v11, 7 }
  0x5f   :  { %554 = vmatpush1.bf16.msra.mxu0 %v1122_v27  ;;  %v1161_v61 = vld [vmem:[#allocation7 + $0x80] ss:$8 sps:$4 sm:$0xff]   ;;  %v1166_v1 = vld [vmem:[#allocation9 + $0x70] sm:$0xff]   ;;  %v1172_v7 = vld [vmem:[#allocation9 + $0x58] sm:$0xff]   ;;  %vm888_vm2 = vcmask 7168  }
  0x60   :  { %309 = vmatpush1.bf16.msra.mxu1 %v1106_v14  ;;  %555 = vmatprep.subr.bf16.mxu0 %v1127_v28  ;;  %v1167_v2 = vld [vmem:[#allocation9 + $0x30] sm:$0xff]   ;;  %v1168_v3 = vld [vmem:[#allocation9 + $0x68] sm:$0xff]   ;;  %v1170_v5 = vld [vmem:[#allocation9 + $0x60] sm:$0xff]   ;;  %v212_v13 = vsub.s32 0, %v211_v12 }
  0x61   :  { %310 = vmatprep.subr.bf16.mxu1 %v1107_v15  ;;  %v1169_v4 = vld [vmem:[#allocation9 + $0x28] sm:$0xff]   ;;  %v1171_v6 = vld [vmem:[#allocation9 + $0x20] sm:$0xff]   ;;  %v1173_v8 = vld [vmem:[#allocation9 + $0x18] sm:$0xff]   ;;  %v216_v15 = vsub.s32 1, %v211_v12 }
  0x62   :  { %v1174_v9 = vld [vmem:[#allocation9 + $0x50] sm:$0xff]   ;;  %v208_v14 = vld [vmem:[%s1464_s4] sm:$0x3] }
  0x63   :  { %556 = vmatpush1.bf16.msra.mxu0 %v1125_v29  ;;  %v1175_v10 = vld [vmem:[#allocation9 + $0x10] sm:$0xff]   ;;  %v1176_v28 = vld [vmem:[#allocation9 + $0x48] sm:$0xff]  }
  0x64   :  { %311 = vmatpush1.bf16.msra.mxu1 %v1109_v16  ;;  %557 = vmatprep.subr.bf16.mxu0 %v1130_v30  ;;  %v213_v16 = vrot.slane %v208_v14, %v212_v13  ;;  %v1177_v29 = vld [vmem:[#allocation9 + $0x8] sm:$0xff]   ;;  %v1178_v30 = vld [vmem:[#allocation9 + $0x40] sm:$0xff]  }
  0x65   :  { %312 = vmatprep.subr.bf16.mxu1 %v1110_v17  ;;  %v217_v17 = vrot.slane %v208_v14, %v216_v15 }
  0x67   :  { %558 = vmatpush1.bf16.msra.mxu0 %v1128_v31  ;;  %v1179_v31 = vld [vmem:[#allocation9] sm:$0xff]  }
  0x68   :  { %313 = vmatpush1.bf16.msra.mxu1 %v1112_v18  ;;  %559 = vmatprep.subr.bf16.mxu0 %v1133_v32  ;;  %v377_v32 = vld [vmem:[%s1466_s6] sm:$0x3] }
  0x69   :  { %314 = vmatprep.subr.bf16.mxu1 %v1113_v19 }
  0x6b   :  { %560 = vmatpush1.bf16.msra.mxu0 %v1131_v33  ;;  %v382_v33 = vrot.slane %v377_v32, %v212_v13 }
  0x6c   :  { %315 = vmatpush1.bf16.msra.mxu1 %v1115_v20  ;;  %561 = vmatprep.subr.bf16.mxu0 %v1136_v34  ;;  %v386_v34 = vrot.slane %v377_v32, %v216_v15 }
  0x6d   :  { %1016 = vmatprep.subr.bf16.mxu1 %v1164_v62  ;;  %v1004_v62 = vld [vmem:[%s1470_s10] ss:$0 sm:$0xff] }
  0x6f   :  { %562 = vmatpush1.bf16.msra.mxu0 %v1134_v35 }
  0x70   :  { %563 = vmatprep.subr.bf16.mxu0 %v1139_v36 }
  0x73   :  { %564 = vmatpush1.bf16.msra.mxu0 %v1137_v37 }
  0x74   :  { %565 = vmatprep.subr.bf16.mxu0 %v1142_v38 }
  0x77   :  { %566 = vmatpush2.bf16.msra.mxu0 %v1140_v39 }
  0x78   :  { %567 = vmatprep.subr.bf16.mxu0 %v1145_v40 }
  0x7b   :  { %568 = vmatpush2.bf16.msra.mxu0 %v1143_v41 }
  0x7c   :  { %569 = vmatprep.subr.bf16.mxu0 %v1148_v42 }
  0x7f   :  { %570 = vmatpush2.bf16.msra.mxu0 %v1146_v43 }
  0x80   :  { %571 = vmatprep.subr.bf16.mxu0 %v1151_v44  ;;  %v1180_v44 = vld [vmem:[#allocation10 + $0x38] sm:$0xff]  }
  0x83   :  { %572 = vmatpush2.bf16.msra.mxu0 %v1149_v45 }
  0x84   :  { %573 = vmatprep.subr.bf16.mxu0 %v1154_v46  ;;  %v1181_v46 = vld [vmem:[#allocation10 + $0x30] sm:$0xff]  }
  0x87   :  { %574 = vmatpush2.bf16.msra.mxu0 %v1152_v47  ;;  %v1182_v47 = vld [vmem:[#allocation10 + $0x28] sm:$0xff]  }
  0x88   :  { %575 = vmatprep.subr.bf16.mxu0 %v1157_v48  ;;  %v1183_v48 = vld [vmem:[#allocation10 + $0x20] sm:$0xff]  }
  0x8b   :  { %576 = vmatpush2.bf16.msra.mxu0 %v1155_v49  ;;  %v1184_v49 = vld [vmem:[#allocation10 + $0x18] sm:$0xff]  }
  0x8c   :  { %577 = vmatprep.subr.bf16.mxu0 %v1160_v58 }
  0x8f   :  { %578 = vmatpush2.bf16.msra.mxu0 %v1158_v59 }
  0x90   :  { %579 = vmatprep.subr.bf16.mxu0 %v1163_v60 }
  0x93   :  { %580 = vmatpush2.bf16.msra.mxu0 %v1161_v61 }
 0x116   :  { %v184_v51 = vpop.f32.mrf.mxu0 }
 0x117   :  { %v185_v52 = vadd.f32 %v935_v50, %v184_v51  ;;  %v1185_v50 = vld [vmem:[#allocation10 + $0x10] sm:$0xff]   ;;  %v1186_v51 = vld [vmem:[#allocation10 + $0x8] sm:$0xff]  }
 0x118   :  { %v1053_v53 = vpop.f32.mrf.mxu0 }
 0x119   :  { %v190_v54 = vmax.f32 %v185_v52, 0.0  ;;  %v1187_v52 = vld [vmem:[#allocation10] sm:$0xff]  }
 0x11a   :  { %v187_v55 = vpop.f32.mrf.mxu0 }
 0x11b   :  { %v191_v56 = vpack.c.bf16 %v190_v54, %v190_v54  ;;  %v987_v54 = vld [vmem:[%s1468_s8] ss:$0 sm:$0xff] }
 0x11c   :  { %v1054_v57 = vpop.f32.mrf.mxu0 }
 0x11d   :  { %333 = vmatmul.mubr.bf16.vlgmr.msra.gmra.mxu1 %v191_v56 }
 0x11e   :  { %1017 = vmatpush3.bf16.msra.mxu1 %v1165_v63 }
 0x11f   :  { %1018 = vmatprep.subr.bf16.mxu1 %v1166_v1 }
 0x122   :  { %1019 = vmatpush3.bf16.msra.mxu1 %v1167_v2 }
 0x123   :  { %1020 = vmatprep.subr.bf16.mxu1 %v1168_v3 }
 0x126   :  { %1021 = vmatpush3.bf16.msra.mxu1 %v1169_v4 }
 0x127   :  { %1022 = vmatprep.subr.bf16.mxu1 %v1170_v5 }
 0x12a   :  { %1023 = vmatpush3.bf16.msra.mxu1 %v1171_v6 }
 0x12b   :  { %1024 = vmatprep.subr.bf16.mxu1 %v1172_v7 }
 0x12e   :  { %1025 = vmatpush3.bf16.msra.mxu1 %v1173_v8 }
 0x12f   :  { %1026 = vmatprep.subr.bf16.mxu1 %v1174_v9 }
 0x132   :  { %1027 = vmatpush3.bf16.msra.mxu1 %v1175_v10 }
 0x133   :  { %1028 = vmatprep.subr.bf16.mxu1 %v1176_v28 }
 0x136   :  { %1029 = vmatpush3.bf16.msra.mxu1 %v1177_v29 }
 0x137   :  { %1030 = vmatprep.subr.bf16.mxu1 %v1178_v30 }
 0x13a   :  { %1031 = vmatpush3.bf16.msra.mxu1 %v1179_v31 }
 0x13b   :  { %1055 = vmatprep.subr.bf16.mxu1 %v1332_v0 }
 0x1dd   :  { %v334_v18 = vpop.f32.mrf.mxu1 }
 0x1de   :  { %v335_v19 = vadd.f32 %v334_v18, %v213_v16 }
 0x1df   :  { %v336_v20 = vpop.f32.mrf.mxu1 }
 0x1e0   :  { %v337_v21 = vadd.f32 %v336_v20, %v217_v17  ;;  %v341_v22 = vmax.f32 %v335_v19, 0.0 }
 0x1e1   :  { %v338_v23 = vpop.f32.mrf.mxu1 }
 0x1e2   :  { %v342_v24 = vmax.f32 %v337_v21, 0.0  ;;  %v343_v27 = vpack.c.bf16 %v341_v22, %v341_v22 }
 0x1e3   :  { %v339_v25 = vpop.f32.mrf.mxu1 }
 0x1e4   :  { %v344_v26 = vpack.c.bf16 %v342_v24, %v342_v24 }
 0x1e6   :  { %581 = vmatprep.mubr.bf16.mxu0 %v344_v26 }
 0x1e7   :  { %582 = vmatmul.mubr.bf16.vlgmr.msra.gmra.mxu0 %v343_v27 }
 0x2a7   :  { %v583_v35 = vpop.f32.mrf.mxu0 }
 0x2a8   :  { %v584_v36 = vadd.f32 %v583_v35, %v382_v33 }
 0x2a9   :  { %v585_v37 = vpop.f32.mrf.mxu0 }
 0x2aa   :  { %v586_v38 = vadd.f32 %v585_v37, %v386_v34  ;;  %v590_v39 = vmax.f32 %v584_v36, 0.0 }
 0x2ab   :  { %v587_v40 = vpop.f32.mrf.mxu0 }
 0x2ac   :  { %v591_v41 = vmax.f32 %v586_v38, 0.0  ;;  %v592_v45 = vpack.c.bf16 %v590_v39, %v590_v39 }
 0x2ad   :  { %v588_v42 = vpop.f32.mrf.mxu0 }
 0x2ae   :  { %v593_v43 = vpack.c.bf16 %v591_v41, %v591_v41 }
 0x2b0   :  { %761 = vmatprep.mubr.bf16.mxu1 %v593_v43 }
 0x2b1   :  { %762 = vmatmul.mubr.bf16.vlgmr.msra.gmra.mxu1 %v592_v45 }
 0x2b2   :  { %1056 = vmatpush3.bf16.msra.mxu1 %v1180_v44  ;;  %1071 = vmatprep.mubr.msk.bf16.mxu1 %vm1333_vm0, %v1332_v0 }
 0x2b3   :  { %1057 = vmatprep.subr.bf16.mxu1 %v1332_v0 }
 0x2b6   :  { %1058 = vmatpush3.bf16.msra.mxu1 %v1181_v46 }
 0x2b7   :  { %1059 = vmatprep.subr.bf16.mxu1 %v1332_v0 }
 0x2ba   :  { %1060 = vmatpush3.bf16.msra.mxu1 %v1182_v47 }
 0x2bb   :  { %1061 = vmatprep.subr.bf16.mxu1 %v1332_v0 }
 0x2be   :  { %1062 = vmatpush3.bf16.msra.mxu1 %v1183_v48 }
 0x2bf   :  { %1063 = vmatprep.subr.bf16.mxu1 %v1332_v0 }
 0x2c2   :  { %1064 = vmatpush3.bf16.msra.mxu1 %v1184_v49 }
 0x2c3   :  { %1065 = vmatprep.subr.bf16.mxu1 %v1332_v0 }
 0x2c6   :  { %1066 = vmatpush3.bf16.msra.mxu1 %v1185_v50 }
 0x2c7   :  { %1067 = vmatprep.subr.bf16.mxu1 %v1332_v0 }
 0x2ca   :  { %1068 = vmatpush3.bf16.msra.mxu1 %v1186_v51 }
 0x2cb   :  { %1069 = vmatprep.subr.bf16.mxu1 %v1332_v0 }
 0x2ce   :  { %1070 = vmatpush3.bf16.msra.mxu1 %v1187_v52 }
 0x371   :  { %v1032_v53 = vpop.f32.mrf.mxu1 }
 0x373   :  { %v1033_v55 = vpop.f32.mrf.mxu1 }
 0x374   :  { %v1034_v56 = vadd.f32 %v1033_v55, %v1032_v53 }
 0x375   :  { %v1035_v57 = vpop.f32.mrf.mxu1 }
 0x376   :  { %v764_v58 = vadd.f32 %v1034_v56, %v987_v54 }
 0x377   :  { %v1036_v59 = vpop.f32.mrf.mxu1 }
 0x378   :  { %v769_v60 = vmax.f32 %v764_v58, 0.0 }
 0x37a   :  { %v770_v61 = vpack.c.bf16 %v769_v60, %v769_v60 }
 0x37c   :  { %1072 = vmatmul.mubr.bf16.vlgmr.msra.gmra.mxu1 %v770_v61 }
 0x43c   :  { %v876_v0 = vpop.f32.mrf.mxu1 }
 0x43d   :  { %v877_v63 = vadd.f32 %v1004_v62, %v876_v0 }
 0x43e   :  { %v1073_v1 = vpop.f32.mrf.mxu1 }
 0x43f   :  { %v882_v2 = vsub.f32 0.0, %v877_v63 }
 0x440   :  { %v879_v3 = vpop.f32.mrf.mxu1 }
 0x441   :  { %v883_v4 = vmul.f32 1.442695, %v882_v2 }
 0x442   :  { %v1074_v5 = vpop.f32.mrf.mxu1 }
 0x443   :  { %1188 = vpow2.f32 %v883_v4 }
 0x450   :  { %v1189_v6 = vpop.eup %1188 }
 0x451   :  { %v885_v7 = vadd.f32 1.0, %v1189_v6 }
 0x453   :  { %1190 = vrcp.f32 %v885_v7 }
 0x460   :  { %v1191_v8 = vpop.eup %1190 }
 0x461   :  { %889 = vst.msk [vmem:[#allocation12] sm:$0xff] %vm888_vm2, %v1191_v8 }
 0x468   :  { %v908_v9 = vld [vmem:[#allocation12] sm:$0x3] }
 0x469   :  { %909 = vst [vmem:[%s1471_s11] sm:$0x3] %v908_v9 }
 0x46a   :  { %927 = vsyncpa [#allocation3], 1 }
 0x46b   :  { %928 = vsyncpa [#allocation5], 1 }
 0x46c   :  { %929 = vsyncpa [#allocation8], 1 }
 0x46d   :  { %930 = vsyncpa [#allocation11], 1 }

</bundles_post_ra>
